<compile_context>
chip_gen: v7x
topology: tpu7x:2x2x1
jax: 0.10.0
libtpu: 0.0.40
codegen_flags: <defaults>
</compile_context>

<pallas_src>
import math

import jax
import jax.numpy as jnp
from jax import lax
from jax.experimental import pallas as pl
from jax.experimental.pallas import tpu as pltpu


def mha_head_kernel(q_ref, k_ref, v_ref,
                    w_qkv_ref, b_qkv_ref, wo_ref, bo_ref,
                    o_ref):
    """One grid step = one (batch, head) pair.

    q_ref/k_ref/v_ref : (1, S, D)      bf16, resident across the head axis.
    w_qkv_ref         : (1, D, 3*d_k)  bf16 fused per-head [Wq|Wk|Wv] slice
                        (1/sqrt(d_k) already folded into the Wq part).
    b_qkv_ref         : (1, 1, 3*d_k)  f32 fused per-head [bq|bk|bv] slice.
    wo_ref            : (1, d_k, D)    bf16 per-head output-projection slice.
    bo_ref            : (1, D)         f32 output-projection bias.
    o_ref             : (1, S, D)      f32, accumulated across the head axis.
    """
    h = pl.program_id(1)
    S = q_ref.shape[1]
    D = o_ref.shape[2]
    d_k = wo_ref.shape[1]

    # Initialize the resident output accumulator with the output bias once.
    @pl.when(h == 0)
    def _():
        o_ref[0] = jnp.broadcast_to(bo_ref[...], (S, D)).astype(o_ref.dtype)

    # Fused per-head projections: one (S, D) @ (D, 3*d_k) matmul on the MXU
    # (bf16 in, f32 accumulate).  q/k/v share the projection input layout, but
    # not the data, so Q uses q_ref, K uses k_ref, V uses v_ref with the
    # matching slice of the fused weight.
    w_qkv = w_qkv_ref[0]
    b_qkv = b_qkv_ref[0]

    Qh = (jnp.dot(q_ref[0], w_qkv[:, 0 * d_k:1 * d_k],
                  preferred_element_type=jnp.float32)
          + b_qkv[:, 0 * d_k:1 * d_k])
    Kh = (jnp.dot(k_ref[0], w_qkv[:, 1 * d_k:2 * d_k],
                  preferred_element_type=jnp.float32)
          + b_qkv[:, 1 * d_k:2 * d_k])
    Vh = (jnp.dot(v_ref[0], w_qkv[:, 2 * d_k:3 * d_k],
                  preferred_element_type=jnp.float32)
          + b_qkv[:, 2 * d_k:3 * d_k])

    # scores = Qh @ Kh^T as a direct contraction over the last dims
    # ('qd,kd->qk'); no explicit transpose materialized.
    scores = lax.dot_general(
        Qh.astype(jnp.bfloat16), Kh.astype(jnp.bfloat16),
        dimension_numbers=(((1,), (1,)), ((), ())),
        preferred_element_type=jnp.float32)                       # (S, S) f32

    # Numerically stable softmax in f32; reciprocal goes to the EUP slot.
    m = jnp.max(scores, axis=-1, keepdims=True)
    e = jnp.exp(scores - m)
    denom = jnp.sum(e, axis=-1, keepdims=True)
    attn = e * pl.reciprocal(denom, approx=True)
    # TODO(synk): nn.Dropout(p) on attn is identity in eval mode; not applied.

    head_out = jnp.dot(attn.astype(jnp.bfloat16), Vh.astype(jnp.bfloat16),
                       preferred_element_type=jnp.float32)        # (S, d_k)

    # This head's slice of the output projection, accumulated into the
    # resident output block (replaces a concatenate + full out-proj).
    o_ref[0] += jnp.dot(head_out.astype(jnp.bfloat16), wo_ref[0],
                        preferred_element_type=jnp.float32).astype(o_ref.dtype)


def _estimate_vmem_bytes(S, D, d_k):
    """Rough per-grid-step VMEM footprint (double-buffered I/O + intermediates)."""
    f32, bf16 = 4, 2
    io = 2 * 3 * S * D * bf16 + 2 * S * D * f32                   # q/k/v in, out
    weights = 2 * (3 * D * d_k + d_k * D) * bf16 + 2 * (3 * d_k + D) * f32
    interm = (6 * S * d_k + 3 * S * S + S * D) * f32
    return int(2 * (io + weights + interm))                       # 2x slack


def multi_head_attention(q, k, v, params, num_heads):
    """q, k, v: [B, S, D] f32.  params: pre-transposed f32 weights and biases."""
    B, S, D = q.shape
    assert D % num_heads == 0
    d_k = D // num_heads
    wq_t, bq, wk_t, bk, wv_t, bv, wo_t, bo = params
    scale = 1.0 / math.sqrt(d_k)

    # Per-head weight layout so the kernel never slices refs at sub-128 lane
    # offsets; bf16 for the MXU; 1/sqrt(d_k) folded into the q projection.
    def split_in(w):                       # (D, D) -> (H, D, d_k)
        return jnp.transpose(w.reshape(D, num_heads, d_k), (1, 0, 2))

    w_qkv_h = jnp.concatenate(
        [split_in(wq_t * scale), split_in(wk_t), split_in(wv_t)],
        axis=-1).astype(jnp.bfloat16)                              # (H, D, 3*d_k)
    wo_h = wo_t.reshape(num_heads, d_k, D).astype(jnp.bfloat16)    # (H, d_k, D)

    def split_b(b):                        # (1, D) -> (H, 1, d_k)
        return b.reshape(num_heads, 1, d_k)

    b_qkv_h = jnp.concatenate(
        [split_b(bq * scale), split_b(bk), split_b(bv)], axis=-1)  # (H, 1, 3*d_k)

    qkv_spec = pl.BlockSpec((1, S, D), lambda b, h: (b, 0, 0))
    w_in_spec = pl.BlockSpec((1, D, 3 * d_k), lambda b, h: (h, 0, 0))
    b_in_spec = pl.BlockSpec((1, 1, 3 * d_k), lambda b, h: (h, 0, 0))
    w_out_spec = pl.BlockSpec((1, d_k, D), lambda b, h: (h, 0, 0))
    b_out_spec = pl.BlockSpec((1, D), lambda b, h: (0, 0))
    out_spec = pl.BlockSpec((1, S, D), lambda b, h: (b, 0, 0))

    vmem_limit = min(64 * 1024 * 1024,
                     max(32 * 1024 * 1024, _estimate_vmem_bytes(S, D, d_k)))

    return pl.pallas_call(
        mha_head_kernel,
        out_shape=jax.ShapeDtypeStruct((B, S, D), jnp.float32),
        grid=(B, num_heads),
        in_specs=[qkv_spec, qkv_spec, qkv_spec,
                  w_in_spec, b_in_spec, w_out_spec, b_out_spec],
        out_specs=out_spec,
        compiler_params=pltpu.CompilerParams(
            dimension_semantics=("parallel", "arbitrary"),
            vmem_limit_bytes=vmem_limit),
    )(q.astype(jnp.bfloat16), k.astype(jnp.bfloat16), v.astype(jnp.bfloat16),
      w_qkv_h, b_qkv_h, wo_h, bo)


def init_params(key, d_model):
    """Deterministic init matching nn.Linear shapes (weights stored transposed)."""
    bound = 1.0 / math.sqrt(d_model)
    keys = jax.random.split(key, 8)

    def lin(kw, kb):
        w = jax.random.uniform(kw, (d_model, d_model), jnp.float32, -bound, bound)
        b = jax.random.uniform(kb, (1, d_model), jnp.float32, -bound, bound)
        return w.T, b                       # store W^T so x @ W^T + b

    wq_t, bq = lin(keys[0], keys[1])
    wk_t, bk = lin(keys[2], keys[3])
    wv_t, bv = lin(keys[4], keys[5])
    wo_t, bo = lin(keys[6], keys[7])
    return (wq_t, bq, wk_t, bk, wv_t, bv, wo_t, bo)


def reference_mha(q, k, v, params, num_heads):
    """Pure-JAX f32 reference replicating the PyTorch forward (mask=None, eval)."""
    wq_t, bq, wk_t, bk, wv_t, bv, wo_t, bo = params
    B, S, D = q.shape
    d_k = D // num_heads
    Q = (q @ wq_t + bq).reshape(B, S, num_heads, d_k).transpose(0, 2, 1, 3)
    K = (k @ wk_t + bk).reshape(B, S, num_heads, d_k).transpose(0, 2, 1, 3)
    V = (v @ wv_t + bv).reshape(B, S, num_heads, d_k).transpose(0, 2, 1, 3)
    scores = jnp.einsum('bhqd,bhkd->bhqk', Q, K) / math.sqrt(d_k)
    attn = jax.nn.softmax(scores, axis=-1)
    out = jnp.einsum('bhqk,bhkd->bhqd', attn, V)
    out = out.transpose(0, 2, 1, 3).reshape(B, S, D)
    return out @ wo_t + bo


if __name__ == "__main__":
    B, S, D, H = 2, 8, 32, 4

    key = jax.random.PRNGKey(0)
    kq, kk, kv, kp = jax.random.split(key, 4)
    q = jax.random.normal(kq, (B, S, D), jnp.float32)
    k = jax.random.normal(kk, (B, S, D), jnp.float32)
    v = jax.random.normal(kv, (B, S, D), jnp.float32)
    params = init_params(kp, D)

    out = multi_head_attention(q, k, v, params, H)
    out = jax.block_until_ready(out)

    ref = reference_mha(q, k, v, params, H)
    assert out.shape == (B, S, D)
    # bf16 MXU inputs + approx reciprocal -> compare against f32 ref loosely.
    assert jnp.allclose(out, ref, atol=5e-2, rtol=5e-2), "mismatch vs reference"

    print("KERNEL_OK")
</pallas_src>

<mosaic_0001>
module attributes {stable_mosaic.version = 11 : i64} {
  func.func @mha_head_kernel(%arg0: i32, %arg1: i32, %arg2: memref<1x8x32xbf16, #tpu.memory_space<vmem>>, %arg3: memref<1x8x32xbf16, #tpu.memory_space<vmem>>, %arg4: memref<1x8x32xbf16, #tpu.memory_space<vmem>>, %arg5: memref<1x32x24xbf16, #tpu.memory_space<vmem>>, %arg6: memref<1x1x24xf32, #tpu.memory_space<vmem>>, %arg7: memref<1x8x32xbf16, #tpu.memory_space<vmem>>, %arg8: memref<1x32xf32, #tpu.memory_space<vmem>>, %arg9: memref<1x8x32xf32, #tpu.memory_space<vmem>>) attributes {dimension_semantics = [#tpu.dimension_semantics<parallel>, #tpu.dimension_semantics<arbitrary>], iteration_bounds = array<i64: 2, 4>, scalar_prefetch = 0 : i64, scratch_operands = 0 : i64, tpu.core_type = #tpu.core_type<tc>, window_params = [{transform_indices = @transform_0, window_bounds = array<i64: 1, 8, 32>}, {transform_indices = @transform_1, window_bounds = array<i64: 1, 8, 32>}, {transform_indices = @transform_2, window_bounds = array<i64: 1, 8, 32>}, {transform_indices = @transform_3, window_bounds = array<i64: 1, 32, 24>}, {transform_indices = @transform_4, window_bounds = array<i64: 1, 1, 24>}, {transform_indices = @transform_5, window_bounds = array<i64: 1, 8, 32>}, {pipeline_mode = #tpu.pipeline_mode<synchronous>, transform_indices = @transform_6, window_bounds = array<i64: 1, 32>}, {transform_indices = @transform_7, window_bounds = array<i64: 1, 8, 32>}]} {
    %c0_i32 = arith.constant 0 : i32
    %0 = arith.cmpi eq, %arg1, %c0_i32 : i32
    %1 = arith.extui %0 : i1 to i32
    %c0_i32_0 = arith.constant 0 : i32
    %2 = arith.cmpi ne, %1, %c0_i32_0 : i32
    scf.if %2 {
      %c0_31 = arith.constant 0 : index
      %c0_32 = arith.constant 0 : index
      %54 = vector.load %arg8[%c0_31, %c0_32] : memref<1x32xf32, #tpu.memory_space<vmem>>, vector<1x32xf32>
      %55 = vector.shape_cast %54 : vector<1x32xf32> to vector<1x32xf32>
      %56 = vector.broadcast %55 : vector<1x32xf32> to vector<8x32xf32>
      %c0_33 = arith.constant 0 : index
      %c0_34 = arith.constant 0 : index
      %c0_35 = arith.constant 0 : index
      %57 = vector.load %arg9[%c0_33, %c0_34, %c0_35] : memref<1x8x32xf32, #tpu.memory_space<vmem>>, vector<1x8x32xf32>
      %58 = vector.shape_cast %57 : vector<1x8x32xf32> to vector<8x32xf32>
      %59 = vector.shape_cast %56 : vector<8x32xf32> to vector<1x8x32xf32>
      tpu.vector_store %arg9[%c0_33, %c0_34, %c0_35], %59 {strides = array<i32>} : memref<1x8x32xf32, #tpu.memory_space<vmem>>, vector<1x8x32xf32>,
    } else {
    }
    %c0 = arith.constant 0 : index
    %c0_1 = arith.constant 0 : index
    %c0_2 = arith.constant 0 : index
    %3 = vector.load %arg5[%c0, %c0_1, %c0_2] : memref<1x32x24xbf16, #tpu.memory_space<vmem>>, vector<1x32x24xbf16>
    %4 = vector.shape_cast %3 : vector<1x32x24xbf16> to vector<32x24xbf16>
    %c0_3 = arith.constant 0 : index
    %c0_4 = arith.constant 0 : index
    %c0_5 = arith.constant 0 : index
    %5 = vector.load %arg6[%c0_3, %c0_4, %c0_5] : memref<1x1x24xf32, #tpu.memory_space<vmem>>, vector<1x1x24xf32>
    %6 = vector.shape_cast %5 : vector<1x1x24xf32> to vector<1x24xf32>
    %c0_6 = arith.constant 0 : index
    %c0_7 = arith.constant 0 : index
    %c0_8 = arith.constant 0 : index
    %7 = vector.load %arg2[%c0_6, %c0_7, %c0_8] : memref<1x8x32xbf16, #tpu.memory_space<vmem>>, vector<1x8x32xbf16>
    %8 = vector.shape_cast %7 : vector<1x8x32xbf16> to vector<8x32xbf16>
    %9 = vector.extract_strided_slice %4 {offsets = [0, 0], sizes = [32, 8], strides = [1, 1]} : vector<32x24xbf16> to vector<32x8xbf16>
    %cst = arith.constant dense<0.000000e+00> : vector<8x8xf32>
    %10 = tpu.matmul %8, %9, %cst {dimension_numbers = #tpu.dot_dimension_numbers<[1], [0], [0], [1], [0, 0, 1, 1], [], []>} : vector<8x32xbf16>, vector<32x8xbf16>, vector<8x8xf32> -> vector<8x8xf32>
    %11 = vector.extract_strided_slice %6 {offsets = [0, 0], sizes = [1, 8], strides = [1, 1]} : vector<1x24xf32> to vector<1x8xf32>
    %12 = vector.broadcast %11 : vector<1x8xf32> to vector<8x8xf32>
    %13 = arith.addf %10, %12 : vector<8x8xf32>
    %c0_9 = arith.constant 0 : index
    %c0_10 = arith.constant 0 : index
    %c0_11 = arith.constant 0 : index
    %14 = vector.load %arg3[%c0_9, %c0_10, %c0_11] : memref<1x8x32xbf16, #tpu.memory_space<vmem>>, vector<1x8x32xbf16>
    %15 = vector.shape_cast %14 : vector<1x8x32xbf16> to vector<8x32xbf16>
    %16 = vector.extract_strided_slice %4 {offsets = [0, 8], sizes = [32, 8], strides = [1, 1]} : vector<32x24xbf16> to vector<32x8xbf16>
    %cst_12 = arith.constant dense<0.000000e+00> : vector<8x8xf32>
    %17 = tpu.matmul %15, %16, %cst_12 {dimension_numbers = #tpu.dot_dimension_numbers<[1], [0], [0], [1], [0, 0, 1, 1], [], []>} : vector<8x32xbf16>, vector<32x8xbf16>, vector<8x8xf32> -> vector<8x8xf32>
    %18 = vector.extract_strided_slice %6 {offsets = [0, 8], sizes = [1, 8], strides = [1, 1]} : vector<1x24xf32> to vector<1x8xf32>
    %19 = vector.broadcast %18 : vector<1x8xf32> to vector<8x8xf32>
    %20 = arith.addf %17, %19 : vector<8x8xf32>
    %c0_13 = arith.constant 0 : index
    %c0_14 = arith.constant 0 : index
    %c0_15 = arith.constant 0 : index
    %21 = vector.load %arg4[%c0_13, %c0_14, %c0_15] : memref<1x8x32xbf16, #tpu.memory_space<vmem>>, vector<1x8x32xbf16>
    %22 = vector.shape_cast %21 : vector<1x8x32xbf16> to vector<8x32xbf16>
    %23 = vector.extract_strided_slice %4 {offsets = [0, 16], sizes = [32, 8], strides = [1, 1]} : vector<32x24xbf16> to vector<32x8xbf16>
    %cst_16 = arith.constant dense<0.000000e+00> : vector<8x8xf32>
    %24 = tpu.matmul %22, %23, %cst_16 {dimension_numbers = #tpu.dot_dimension_numbers<[1], [0], [0], [1], [0, 0, 1, 1], [], []>} : vector<8x32xbf16>, vector<32x8xbf16>, vector<8x8xf32> -> vector<8x8xf32>
    %25 = vector.extract_strided_slice %6 {offsets = [0, 16], sizes = [1, 8], strides = [1, 1]} : vector<1x24xf32> to vector<1x8xf32>
    %26 = vector.broadcast %25 : vector<1x8xf32> to vector<8x8xf32>
    %27 = arith.addf %24, %26 : vector<8x8xf32>
    %28 = arith.truncf %13 : vector<8x8xf32> to vector<8x8xbf16>
    %29 = arith.truncf %20 : vector<8x8xf32> to vector<8x8xbf16>
    %cst_17 = arith.constant dense<0.000000e+00> : vector<8x8xf32>
    %30 = tpu.matmul %28, %29, %cst_17 {dimension_numbers = #tpu.dot_dimension_numbers<[1], [1], [0], [0], [0, 0, 1, 0], [], []>} : vector<8x8xbf16>, vector<8x8xbf16>, vector<8x8xf32> -> vector<8x8xf32>
    %cst_18 = arith.constant dense<0xFF800000> : vector<8xf32>
    %31 = vector.multi_reduction <maximumf>, %30, %cst_18 [1] : vector<8x8xf32> to vector<8xf32>
    %32 = vector.shape_cast %31 : vector<8xf32> to vector<8x1xf32>
    %33 = vector.broadcast %32 : vector<8x1xf32> to vector<8x8xf32>
    %34 = arith.subf %30, %33 : vector<8x8xf32>
    %35 = math.exp %34 : vector<8x8xf32>
    %cst_19 = arith.constant dense<0.000000e+00> : vector<8xf32>
    %36 = vector.multi_reduction <add>, %35, %cst_19 [1] : vector<8x8xf32> to vector<8xf32>
    %37 = vector.shape_cast %36 : vector<8xf32> to vector<8x1xf32>
    %38 = tpu.reciprocal %37 {approx = true} : vector<8x1xf32> -> vector<8x1xf32>
    %39 = vector.broadcast %38 : vector<8x1xf32> to vector<8x8xf32>
    %40 = arith.mulf %35, %39 : vector<8x8xf32>
    %41 = arith.truncf %40 : vector<8x8xf32> to vector<8x8xbf16>
    %42 = arith.truncf %27 : vector<8x8xf32> to vector<8x8xbf16>
    %cst_20 = arith.constant dense<0.000000e+00> : vector<8x8xf32>
    %43 = tpu.matmul %41, %42, %cst_20 {dimension_numbers = #tpu.dot_dimension_numbers<[1], [0], [0], [1], [0, 0, 1, 1], [], []>} : vector<8x8xbf16>, vector<8x8xbf16>, vector<8x8xf32> -> vector<8x8xf32>
    %c0_21 = arith.constant 0 : index
    %c0_22 = arith.constant 0 : index
    %c0_23 = arith.constant 0 : index
    %44 = vector.load %arg9[%c0_21, %c0_22, %c0_23] : memref<1x8x32xf32, #tpu.memory_space<vmem>>, vector<1x8x32xf32>
    %45 = vector.shape_cast %44 : vector<1x8x32xf32> to vector<8x32xf32>
    %46 = arith.truncf %43 : vector<8x8xf32> to vector<8x8xbf16>
    %c0_24 = arith.constant 0 : index
    %c0_25 = arith.constant 0 : index
    %c0_26 = arith.constant 0 : index
    %47 = vector.load %arg7[%c0_24, %c0_25, %c0_26] : memref<1x8x32xbf16, #tpu.memory_space<vmem>>, vector<1x8x32xbf16>
    %48 = vector.shape_cast %47 : vector<1x8x32xbf16> to vector<8x32xbf16>
    %cst_27 = arith.constant dense<0.000000e+00> : vector<8x32xf32>
    %49 = tpu.matmul %46, %48, %cst_27 {dimension_numbers = #tpu.dot_dimension_numbers<[1], [0], [0], [1], [0, 0, 1, 1], [], []>} : vector<8x8xbf16>, vector<8x32xbf16>, vector<8x32xf32> -> vector<8x32xf32>
    %50 = arith.addf %45, %49 : vector<8x32xf32>
    %c0_28 = arith.constant 0 : index
    %c0_29 = arith.constant 0 : index
    %c0_30 = arith.constant 0 : index
    %51 = vector.load %arg9[%c0_28, %c0_29, %c0_30] : memref<1x8x32xf32, #tpu.memory_space<vmem>>, vector<1x8x32xf32>
    %52 = vector.shape_cast %51 : vector<1x8x32xf32> to vector<8x32xf32>
    %53 = vector.shape_cast %50 : vector<8x32xf32> to vector<1x8x32xf32>
    tpu.vector_store %arg9[%c0_28, %c0_29, %c0_30], %53 {strides = array<i32>} : memref<1x8x32xf32, #tpu.memory_space<vmem>>, vector<1x8x32xf32>,
    return
  }
  func.func @transform_0(%arg0: i32, %arg1: i32) -> (i32, i32, i32) {
    %c0_i32 = arith.constant 0 : i32
    %c0_i32_0 = arith.constant 0 : i32
    %c0_i32_1 = arith.constant 0 : i32
    return %arg0, %c0_i32, %c0_i32_0 : i32, i32, i32
  }
  func.func @transform_1(%arg0: i32, %arg1: i32) -> (i32, i32, i32) {
    %c0_i32 = arith.constant 0 : i32
    %c0_i32_0 = arith.constant 0 : i32
    %c0_i32_1 = arith.constant 0 : i32
    return %arg0, %c0_i32, %c0_i32_0 : i32, i32, i32
  }
  func.func @transform_2(%arg0: i32, %arg1: i32) -> (i32, i32, i32) {
    %c0_i32 = arith.constant 0 : i32
    %c0_i32_0 = arith.constant 0 : i32
    %c0_i32_1 = arith.constant 0 : i32
    return %arg0, %c0_i32, %c0_i32_0 : i32, i32, i32
  }
  func.func @transform_3(%arg0: i32, %arg1: i32) -> (i32, i32, i32) {
    %c0_i32 = arith.constant 0 : i32
    %c0_i32_0 = arith.constant 0 : i32
    %c0_i32_1 = arith.constant 0 : i32
    return %arg1, %c0_i32, %c0_i32_0 : i32, i32, i32
  }
  func.func @transform_4(%arg0: i32, %arg1: i32) -> (i32, i32, i32) {
    %c0_i32 = arith.constant 0 : i32
    %c0_i32_0 = arith.constant 0 : i32
    %c0_i32_1 = arith.constant 0 : i32
    return %arg1, %c0_i32, %c0_i32_0 : i32, i32, i32
  }
  func.func @transform_5(%arg0: i32, %arg1: i32) -> (i32, i32, i32) {
    %c0_i32 = arith.constant 0 : i32
    %c0_i32_0 = arith.constant 0 : i32
    %c0_i32_1 = arith.constant 0 : i32
    return %arg1, %c0_i32, %c0_i32_0 : i32, i32, i32
  }
  func.func @transform_6(%arg0: i32, %arg1: i32) -> (i32, i32) {
    %c0_i32 = arith.constant 0 : i32
    %c0_i32_0 = arith.constant 0 : i32
    %c0_i32_1 = arith.constant 0 : i32
    return %c0_i32, %c0_i32_0 : i32, i32
  }
  func.func @transform_7(%arg0: i32, %arg1: i32) -> (i32, i32, i32) {
    %c0_i32 = arith.constant 0 : i32
    %c0_i32_0 = arith.constant 0 : i32
    %c0_i32_1 = arith.constant 0 : i32
    return %arg0, %c0_i32, %c0_i32_0 : i32, i32, i32
  }
}

</mosaic_0001>

<bundles_post_ra>
// kernel: tpu_custom_call.1
= control target key start
LH: loop header
LB: loop body
LE: loop exit
PB: predicated region body
PF: predicated region fallthrough
CT: control target
= control target key end

     0   :  { %s1377_s0 = inlined_call_operand.vmem [shape: bf16[2,8,32], index: 0, kind: input, shape index: {}]   ;;  %s1378_s1 = inlined_call_operand.vmem [shape: bf16[2,8,32], index: 1, kind: input, shape index: {}]   ;;  %s1379_s2 = inlined_call_operand.vmem [shape: bf16[2,8,32], index: 2, kind: input, shape index: {}]   ;;  %s1380_s3 = inlined_call_operand.vmem [shape: bf16[4,32,24], index: 3, kind: input, shape index: {}]   ;;  %s1381_s4 = inlined_call_operand.vmem [shape: f32[4,1,24], index: 4, kind: input, shape index: {}]   ;;  %s1382_s5 = inlined_call_operand.vmem [shape: bf16[4,8,32], index: 5, kind: input, shape index: {}]   ;;  %s1383_s6 = inlined_call_operand.vmem [shape: f32[1,32], index: 6, kind: input, shape index: {}]   ;;  %s1384_s7 = inlined_call_operand.hbm [shape: f32[2,8,32], index: 7, kind: output, shape index: {}]  }
   0x1   :  { %1395 = sst [smem:[#allocation14_spill]] %s1384_s7 }
   0x2   :  { %12 = vsyncpa [#allocation3], 0 }
   0x3   :  { %14 = vsyncpa [#allocation3 + $0x1], 0  ;;  %s1167_s24 = smov 0   ;;  %s1169_s25 = smov 0  }
   0x4   :  { %s1171_s26 = smov 0   ;;  %s1173_s27 = smov 0  }
   0x5   :  { %s1175_s28 = smov 0   ;;  %s1177_s29 = smov 0  }
   0x6   :  { %s1179_s30 = smov 0   ;;  %s1181_s8 = smov 0  }
   0x7 LB: > { %1396 = sst [smem:[#allocation5_spill]] %s1092_s24  ;;  %s860_s9 = sadd.s32 4294967295, %s1120_s8   ;;  %s1120_s8 = sphi %s1181_s8, %s20_s8   ;;  %s1116_s30 = sphi %s1179_s30, %s1418_s30   ;;  %s1112_s29 = sphi %s1177_s29, %s1417_s29   ;;  %s1108_s28 = sphi %s1175_s28, %s1416_s28   ;;  %s1104_s27 = sphi %s1173_s27, %s1415_s27   ;;  %s1100_s26 = sphi %s1171_s26, %s1414_s26   ;;  %s1096_s25 = sphi %s1169_s25, %s1420_s25   ;;  %s1092_s24 = sphi %s1167_s24, %s1419_s24  }
   0x8   : > { %1397 = sst [smem:[#allocation6_spill]] %s1100_s26  ;;  %s861_s10 = sadd.s32 4294967294, %s1120_s8  }
   0x9   : > { %1398 = sst [smem:[#allocation7_spill]] %s1112_s29  ;;  %s29_s11 = sadd.s32 1, %s1112_s29 }
   0xa   : > { %1399 = sst [smem:[#allocation8_spill]] %s1116_s30  ;;  %p30_p0 = scmp.ge.s32.totalorder %s29_s11, 4 }
   0xb   : > { %1400 = sst [smem:[#allocation9_spill]] %s1120_s8  ;;  %s32_s12 = sadd.s32 1, %s1116_s30 }
   0xc   : > { %p226_p1 = scmp.ne.s32.totalorder %s1100_s26, %s1096_s25  ;;  %p227_p2 = scmp.eq.s32.totalorder %s860_s9, 7 }
   0xd   : > { %s1422_s11 = smov (%p30_p0, %s29_s11), 0  ;;  %s1424_s12 = smov (!%p30_p0, %s32_s12), %s1116_s30 }
   0xe   : > { %1401 = sst [smem:[#allocation10_spill]] %s1422_s11  ;;  %p1216_p3 = por %p227_p2, %p226_p1 }
   0xf   : > { %p232_p4 = scmp.ne.s32.totalorder %s1096_s25, %s1092_s24  ;;  %p34_p5 = scmp.ge.s32.totalorder %s1424_s12, 2 }
  0x10   : > { %p233_p6 = scmp.eq.s32.totalorder %s861_s10, 7  ;;  %p864_p7 = scmp.ge.s32.totalorder %s1120_s8, 1 }
  0x11   : > { %p296_p8 = scmp.lt.s32.totalorder %s1120_s8, 9  ;;  %s1426_s12 = smov (%p34_p5, %s1424_s12), 0 }
  0x12   : > { %1403 = sst [smem:[#allocation11_spill]] %s1426_s12  ;;  %p1226_p9 = por %p233_p6, %p232_p4 }
  0x13   : > { %p297_p10 = pnand %p864_p7, %p296_p8  ;;  %s213_s15 = ssub.s32 %s1116_s30, %s1426_s12 }
  0x14   : > { %s1404_s14 = scalar_select %p1226_p9, 1, 0 }
  0x15   : > { %s216_s16 = sadd.s32 1, %s1100_s26  ;;  %p214_p11 = scmp.eq.s32.totalorder %s213_s15, 0 }
  0x16   : > { %1405 = sst [smem:[#allocation12_spill]] %s1404_s14  ;;  %300 = sbr.rel (%p297_p10) target bundleno = 1355 (0x54b), region = 48 }
  0x17   : > { %s1234_s17 = scalar_select %p214_p11, %s1100_s26, %s216_s16  }
  0x18   : > { %s1387_s18 = sand.u32 (!%p297_p10), 1, %s1096_s25   ;;  %p347_p12 = scmp.lt.s32.totalorder (!%p297_p10), %s1108_s28, 1 }
  0x19   : > { %1406 = sst [smem:[#allocation13_spill]] %s1234_s17  ;;  %s865_s19 = sshll.u32 (!%p297_p10), %s1387_s18, 3 }
  0x1a   : > { %p359_p13 = scmp.lt.s32.totalorder (!%p297_p10), %s1104_s27, 3  ;;  %s1268_s15 = scalar_lea.vmem (!%p297_p10), [#allocation2], %s865_s19 }
  0x1b   : > { %p872_p0 = scmp.ne.s32.totalorder (!%p297_p10), %s1104_s27, 0 }
  0x1d   : > { %s348_s20 = scalar_select %p347_p12, %s1108_s28, 1 }
  0x1e   : > { %s360_s21 = scalar_select %p359_p13, %s1104_s27, 3 }
  0x1f   : > { %s1243_s22 = sshll.u32 %s348_s20, 2  ;;  %375 = sbr.rel (%p872_p0) target bundleno = 38 (0x26), region = 52  ;;  %v873_v0 = vld [vmem:[%s1383_s6] ss:$0 sm:$0xff] (!%p872_p0)  ;;  %vm383_vm0 = vcmask (!%p872_p0), 261120  }
  0x20   : > { %s354_s12 = scalar_lea.vmem %s1378_s1, %s1243_s22  ;;  %s358_s18 = scalar_lea.vmem %s1379_s2, %s1243_s22  ;;  %384 = vst.msk [vmem:[%s1268_s15] sm:$0xff] (!%p872_p0), %vm383_vm0, %v873_v0 }
  0x21   : > { %s887_s29 = sshll.u32 %s360_s21, 4  ;;  %s366_s23 = scalar_lea.vmem %s1381_s4, %s360_s21 }
  0x22   : > { %s363_s20 = scalar_lea.vmem %s1380_s3, %s887_s29  ;;  %s871_s9 = sshll.u32 %s360_s21, 2 }
  0x23   : > { %s1266_s7 = scalar_lea.vmem %s1382_s5, %s871_s9 }
  0x26 PF: > { %v1020_v1 = vld [vmem:[%s363_s20] sm:$0xff]   ;;  %s1122_s24 = smov 120   ;;  %v1021_v2 = vld [vmem:[%s363_s20 + $0x8] sm:$0xff]   ;;  %v1123_v3 = vmov 0.0   ;;  %vm1124_vm1 = vmmov 0   ;;  %s1407_s29 = scalar_lea.vmem %s1377_s0, %s1243_s22  ;;  %vm409_vm2 = vcmask 261120  }
  0x27   : > { %454 = vrot.lane.b32.xlu0 %v1020_v1, %s1122_s24  ;;  %911 = vmatprep.subr.bf16.mxu1 %v1123_v3  ;;  %v1276_v4 = vld [vmem:[%s366_s23] ss:$0 sm:$0xff]  ;;  %s1125_s17 = smov 112   ;;  %vm561_vm3 = vcmask 64512   ;;  %vm624_vm4 = vcmask 1043456   ;;  %s1408_s10 = sld [smem:[#allocation14_spill]] }
  0x28   : > { %903 = vmatprep.subr.bf16.mxu0 %v1123_v3  ;;  %915 = vmatprep.mubr.msk.bf16.mxu1 %vm1124_vm1, %v1123_v3  ;;  %v390_v5 = vld [vmem:[%s1407_s29] sm:$0xf]  ;;  %s1409_s20 = sand.u32 1, %s1096_s25   ;;  %s1126_s9 = smov [#allocation2]  }
  0x29   : > { %904 = vmatpush3.bf16.msra.mxu0 %v1020_v1  ;;  %907 = vmatprep.mubr.msk.bf16.mxu0 %vm1124_vm1, %v1123_v3  ;;  %v453_v8 = vld [vmem:[%s354_s12] sm:$0xf]  ;;  %s1030_s30 = sshll.u32 %s1126_s9, 4  ;;  %s1031_s30 = int_to_ptr.vmem [resolvable:$false] %s1030_s30 }
  0x2a   : > { %905 = vmatprep.subr.bf16.mxu0 %v1123_v3  ;;  %460 = vrot.lane.b32.xlu1 %v1276_v4, %s1122_s24  ;;  %v506_v25 = vld [vmem:[%s358_s18] sm:$0xf]  ;;  %s733_s18 = sshll.u32 %s1268_s15, 4  ;;  %s1032_s11 = scalar_lea.vmem %s1031_s30, 256  ;;  %s1322_s18 = int_to_ptr.vmem [resolvable:$true] %s733_s18 }
  0x2b   : > { %456 = vrot.lane.b32.xlu0 %v1021_v2, %s1122_s24  ;;  %v670_v40 = vld [vmem:[%s1266_s7] sm:$0xf]  ;;  %s884_s7 = sshll.u32 %s1108_s28, 7  ;;  %s720_s28 = scalar_lea.sflag [#allocation3], %s1409_s20 }
  0x2c   : > { %v675_v41 = vsel %vm624_vm4, %v670_v40, 0  ;;  %v668_v55 = vld [vmem:[%s1268_s15] sm:$0xff]  ;;  %s1026_s23 = scalar_lea.vmem %s1322_s18, 128  ;;  %p1033_p5 = scmp.lt.s32.totalorder %s1322_s18, %s1031_s30 }
  0x2d   : > { %906 = vmatpush3.bf16.msra.mxu0 %v1021_v2  ;;  %s1320_s16 = scalar_lea.hbm %s1408_s10, %s884_s7  ;;  %p1027_p1 = scmp.ne.s32.totalorder %s1322_s18, %s1026_s23 }
  0x2e   : > { %919 = vmatprep.subr.bf16.mxu0 %v1123_v3  ;;  %507 = vrot.lane.b32.xlu1 %v1020_v1, %s1125_s17  ;;  %p1034_p6 = scmp.lt.s32.totalorder %s1032_s11, %s1026_s23 }
  0x2f   : > { %509 = vrot.lane.b32.xlu0 %v1021_v2, %s1125_s17  ;;  %p1028_p2 = pnand %p1027_p1, %p1216_p3 }
  0x30   : > { %908 = vmatmul.mubr.msk.bf16.vlgmr.msra.gmra.mrb[0].mxu0 %vm409_vm2, %v390_v5  ;;  %p1035_p7 = por %p1034_p6, %p1033_p5 }
  0x31   : > { %923 = vmatprep.mubr.msk.bf16.mxu0 %vm1124_vm1, %v1123_v3  ;;  %p1029_p4 = pneg %p1028_p2 }
  0x33   : > { %p1036_p8 = pnand %p1035_p7, %p1029_p4 }
  0x99   : > { %v455_v6 = vpop.permute.xlu0 %454 }
  0x9a   : > { %912 = vmatpush3.bf16.msra.mxu1 %v455_v6 }
  0x9b   : > { %913 = vmatprep.subr.bf16.mxu1 %v1123_v3 }
  0x9c   : > { %v461_v13 = vpop.permute.xlu1 %460 }
  0x9d   : > { %v457_v7 = vpop.permute.xlu0 %456 }
  0x9e   : > { %914 = vmatpush3.bf16.msra.mxu1 %v457_v7 }
  0x9f   : > { %927 = vmatprep.subr.bf16.mxu1 %v1123_v3 }
  0xa0   : > { %v508_v23 = vpop.permute.xlu1 %507 }
  0xa1   : > { %916 = vmatmul.mubr.msk.bf16.vlgmr.msra.gmra.mrb[0].mxu1 %vm409_vm2, %v453_v8  ;;  %920 = vmatpush3.bf16.msra.mxu0 %v508_v23  ;;  %v510_v24 = vpop.permute.xlu0 %509 }
  0xa2   : > { %929 = vmatprep.mubr.msk.bf16.mxu1 %vm1124_vm1, %v1123_v3  ;;  %921 = vmatprep.subr.bf16.mxu0 %v1123_v3 }
  0xa5   : > { %922 = vmatpush3.bf16.msra.mxu0 %v510_v24 }
  0xa6   : > { %933 = vmatprep.subr.bf16.mxu0 %v1123_v3 }
  0xa8   : > { %924 = vmatmul.mubr.msk.bf16.vlgmr.msra.gmra.mrb[4].mxu0 %vm409_vm2, %v506_v25 }
  0xa9   : > { %935 = vmatprep.mubr.msk.bf16.mxu0 %vm1124_vm1, %v1123_v3 }
 0x103   : > { %v447_v9 = vpop.f32.mrb[0].mxu0 }
 0x104   : > { %v909_v10 = vpop.f32.mrb[1].mxu0  ;;  %v448_v21 = vadd.f32 %v1276_v4, %v447_v9 }
 0x105   : > { %v450_v11 = vpop.f32.mrb[2].mxu0 }
 0x106   : > { %v910_v12 = vpop.f32.mrb[3].mxu0  ;;  %v559_v22 = vpack.c.bf16 %v448_v21, %v448_v21 }
 0x174   : > { %v500_v14 = vpop.f32.mrb[0].mxu1 }
 0x175   : > { %v501_v15 = vadd.f32 %v500_v14, %v461_v13  ;;  %v917_v16 = vpop.f32.mrb[1].mxu1 }
 0x176   : > { %v503_v17 = vpop.f32.mrb[2].mxu1 }
 0x177   : > { %v560_v18 = vpack.c.bf16 %v501_v15, %v501_v15  ;;  %v918_v19 = vpop.f32.mrb[3].mxu1 }
 0x179   : > { %v566_v20 = vsel %vm561_vm3, %v560_v18, 0 }
 0x17a   : > { %928 = vmatpush3.bf16.xpose.msra.mxu1 %v566_v20 }
 0x17b   : > { %939 = vmatprep.subr.bf16.mxu1 %v1123_v3  ;;  %v553_v36 = vpop.f32.mrb[4].mxu0 }
 0x17c   : > { %v925_v37 = vpop.f32.mrb[5].mxu0 }
 0x17d   : > { %v556_v38 = vpop.f32.mrb[6].mxu0 }
 0x17e   : > { %v926_v39 = vpop.f32.mrb[7].mxu0 }
 0x181   : > { %930 = vmatmul.mubr.msk.bf16.vlgmr.msra.gmra.mrb[4].mxu1 %vm561_vm3, %v559_v22 }
 0x182   : > { %941 = vmatprep.mubr.msk.bf16.mxu1 %vm1124_vm1, %v1123_v3  ;;  %940 = vmatpush3.bf16.msra.mxu1 %v675_v41 }
 0x254   : > { %v602_v26 = vpop.f32.mrb[4].mxu1 }
 0x255   : > { %v931_v27 = vpop.f32.mrb[5].mxu1  ;;  %v608_v28 = vsel %vm561_vm3, %v602_v26, -inf }
 0x256   : > { %609 = vmax.xlane.f32.xlu1 %v608_v28  ;;  %v605_v29 = vpop.f32.mrb[6].mxu1 }
 0x257   : > { %v932_v30 = vpop.f32.mrb[7].mxu1 }
 0x2e3   : > { %v610_v31 = vpop.xlane.xlu1 %609 }
 0x2e4   : > { %v611_v32 = vsub.f32 %v602_v26, %v610_v31 }
 0x2e6   : > { %v612_v33 = vmul.f32 1.442695, %v611_v32 }
 0x2e8   : > { %1022 = vpow2.f32 %v612_v33 }
 0x2f2   : > { %v1023_v34 = vpop.eup %1022 }
 0x2f3   : > { %v614_v35 = vsel %vm561_vm3, %v1023_v34, 0.0 }
 0x2f4   : > { %615 = vadd.xlane.f32.xlu0 %v614_v35 }
 0x30a   : > { %513 = vrot.lane.b32.xlu0 %v1276_v4, %s1125_s17 }
 0x381   : > { %v616_v42 = vpop.xlane.xlu0 %615 }
 0x382   : > { %1024 = vrcp.f32 %v616_v42 }
 0x385   : > { %v514_v43 = vpop.permute.xlu0 %513 }
 0x386   : > { %v554_v44 = vadd.f32 %v553_v36, %v514_v43 }
 0x388   : > { %v620_v45 = vpack.c.bf16 %v554_v44, %v554_v44 }
 0x38a   : > { %v626_v46 = vsel %vm624_vm4, %v620_v45, 0 }
 0x38b   : > { %934 = vmatpush3.bf16.msra.mxu0 %v626_v46 }
 0x38c   : > { %v1025_v47 = vpop.eup %1024 }
 0x38d   : > { %v618_v48 = vmul.f32 %v1025_v47, %v1023_v34 }
 0x38f   : > { %v619_v49 = vpack.c.bf16 %v618_v48, %v618_v48 }
 0x391   : > { %936 = vmatmul.mubr.msk.bf16.vlgmr.msra.gmra.mrb[8].mxu0 %vm561_vm3, %v619_v49 }
 0x464   : > { %v662_v50 = vpop.f32.mrb[8].mxu0 }
 0x465   : > { %v669_v51 = vpack.c.bf16 %v662_v50, %v662_v50  ;;  %v937_v52 = vpop.f32.mrb[9].mxu0 }
 0x466   : > { %v665_v53 = vpop.f32.mrb[10].mxu0 }
 0x467   : > { %v938_v54 = vpop.f32.mrb[11].mxu0  ;;  %942 = vmatmul.mubr.msk.bf16.vlgmr.msra.gmra.mrb[8].mxu1 %vm561_vm3, %v669_v51 }
 0x53a   : > { %v711_v56 = vpop.f32.mrb[8].mxu1 }
 0x53b   : > { %v717_v57 = vadd.f32 %v711_v56, %v668_v55  ;;  %v943_v58 = vpop.f32.mrb[9].mxu1 }
 0x53c   : > { %v714_v59 = vpop.f32.mrb[10].mxu1 }
 0x53d   : > { %718 = vst.msk [vmem:[%s1268_s15] sm:$0xff] %vm409_vm2, %v717_v57  ;;  %v944_v60 = vpop.f32.mrb[11].mxu1 }
 0x53e   : > { %1039 = shalt.err (!%p1036_p8)
}
 0x53f   : > { %s1040_s15 = scalar_lea.hbm %s1320_s16, 128  ;;  %s1044_s27 = scalar_lea.hbm %s1408_s10, 256 }
 0x540   : > { %p1041_p10 = scmp.ne.s32.totalorder %s1320_s16, %s1040_s15  ;;  %p1045_p13 = scmp.lt.u32.totalorder %s1320_s16, %s1408_s10 }
 0x541   : > { %p1046_p0 = scmp.lt.u32.totalorder %s1044_s27, %s1040_s15  ;;  %p1048_p2 = scmp.lt.u32.totalorder %s1040_s15, %s1320_s16 }
 0x542   : > { %p1042_p11 = pnand %p1041_p10, %p1216_p3 }
 0x543   : > { %p1047_p1 = por %p1046_p0, %p1045_p13 }
 0x544   : > { %p1043_p12 = pneg %p1042_p11 }
 0x545   : > { %p1049_p4 = por %p1048_p2, %p1047_p1 }
 0x547   : > { %p1050_p5 = pnand %p1049_p4, %p1043_p12 }
 0x549   : > { %1053 = shalt.err (!%p1050_p5)
}
 0x54a   : > { %945 = dma.vmem_to_hbm [thread:$0]  (%p1216_p3), %s1322_s18, 128, %s1320_s16, %s720_s28  }
 0x54b PF: > { %s1410_s14 = sld [smem:[#allocation9_spill]]  ;;  %s1411_s17 = sld [smem:[#allocation5_spill]] }
 0x551   : > { %p951_p6 = scmp.ge.s32.totalorder %s1410_s14, 2  ;;  %s745_s19 = sand.u32 1, %s1411_s17  }
 0x552   : > { %s746_s7 = scalar_lea.sflag [#allocation3], %s745_s19 }
 0x553   : > { %p948_p7 = pnand %p951_p6, %p1226_p9 }
 0x555   : > { %1087 = dma.done.wait (!%p948_p7), %s746_s7, 128  }
 0x556   : > { %1089 = vsyncadd (!%p948_p7), %s746_s7, 4294967168  ;;  %s20_s8 = sadd.s32 1, %s1410_s14   ;;  %s1413_s21 = sld [smem:[#allocation6_spill]] }
 0x557   : > { %p17_p8 = scmp.ge.s32.totalorder %s20_s8, 10   ;;  %s1414_s26 = sld [smem:[#allocation13_spill]] }
 0x558   : > { %s1415_s27 = sld [smem:[#allocation7_spill]]  ;;  %s1416_s28 = sld [smem:[#allocation8_spill]] }
 0x559   : > { %s1417_s29 = sld [smem:[#allocation10_spill]]  ;;  %s1418_s30 = sld [smem:[#allocation11_spill]] }
 0x55a   : > { %s1419_s24 = smov %s1096_s25  ;;  %19 = sbr.rel (!%p17_p8) target bundleno = 7 (0x7), region = 102 }
 0x55c   : > { %s1420_s25 = smov %s1413_s21 }
 0x561   :  { %751 = vsyncpa [#allocation3], 1 }
 0x562   :  { %753 = vsyncpa [#allocation3 + $0x1], 1 }

</bundles_post_ra>
